<compile_context>
chip_gen: v5e
topology: v5e:2x2
jax: 0.10.0
libtpu: 0.0.40
codegen_flags: <defaults>
</compile_context>

<pallas_src>
import functools

import jax
import jax.numpy as jnp
import numpy as np
from jax.experimental import pallas as pl
from jax.experimental.pallas import tpu as pltpu


def _round_up(x, m):
    return (x + m - 1) // m * m


# ---------------------------------------------------------------------------
# Kernel: every head's 1x1-conv chain evaluated on one (C_in, tm) pixel tile.
#   h0 = x_tile (cast to compute_dtype in-kernel)
#   h  = relu?(W_l @ h + shift_l)     per layer, f32 accumulate / f32 epilogue
#   per-head slice of the final h is stored to that head's output ref.
# ---------------------------------------------------------------------------
def _taskhead_fused_kernel(x_ref, *refs, group_specs, n_param_refs,
                           compute_dtype):
    out_refs = refs[n_param_refs:]
    x = x_ref[0]                              # (C_in, tm), f32 straight from HBM
    x_c = x.astype(compute_dtype)             # in-kernel cast (VPU, hidden under MXU)

    p = 0
    for spec in group_specs:
        n_layers = spec["n_layers"]
        w_refs = refs[p:p + n_layers]
        s_refs = refs[p + n_layers:p + 2 * n_layers]
        p += 2 * n_layers

        h = x_c
        for li in range(n_layers):
            y = jnp.dot(w_refs[li][...], h.astype(compute_dtype),
                        preferred_element_type=jnp.float32)       # MXU, f32 acc
            y = y + s_refs[li][...]                               # (C_l, 1) bcast
            if spec["relu"][li]:
                y = jnp.maximum(y, 0.0)
            h = y                                                 # f32 between layers
        for out_idx, off, classes in spec["heads"]:
            out_refs[out_idx][0] = h[off:off + classes, :].astype(
                out_refs[out_idx].dtype)


# ---------------------------------------------------------------------------
# Parameter construction (mirrors TaskHead.__init__ / _init_weights)
# ---------------------------------------------------------------------------
def make_taskhead_params(key, in_channels, heads, head_conv_channels,
                         init_bias=-2.19, bn_eps=1e-5):
    """Raw per-head layer params (unfolded, so the reference checks the fold)."""
    params = {}
    for head, (classes, num_conv) in heads.items():
        layers = []
        c_in = in_channels
        for _ in range(num_conv - 1):
            key, wk = jax.random.split(key)
            w = 0.01 * jax.random.normal(wk, (c_in, head_conv_channels),
                                         jnp.float32)
            layers.append(dict(
                w=w, b=jnp.zeros((head_conv_channels,), jnp.float32),
                gamma=jnp.ones((head_conv_channels,), jnp.float32),
                beta=jnp.zeros((head_conv_channels,), jnp.float32),
                mean=jnp.zeros((head_conv_channels,), jnp.float32),
                var=jnp.ones((head_conv_channels,), jnp.float32),
                eps=bn_eps, bn=True, relu=True))
            c_in = head_conv_channels
        key, wk = jax.random.split(key)
        w = 0.01 * jax.random.normal(wk, (c_in, classes), jnp.float32)
        if head == "heatmap":
            b = jnp.full((classes,), init_bias, jnp.float32)
        else:
            b = jnp.zeros((classes,), jnp.float32)   # bias=False in the module
        layers.append(dict(w=w, b=b, bn=False, relu=False))
        params[head] = layers
    return params


def _fold_layer(layer):
    """Fold conv bias + eval-mode BN into (w_eff (Cin,Cout), shift_eff (Cout,))."""
    w, b = layer["w"], layer["b"]
    if layer["bn"]:
        scale = layer["gamma"] / jnp.sqrt(layer["var"] + layer["eps"])
        shift = layer["beta"] - layer["mean"] * scale
        return w * scale[None, :], b * scale + shift
    return w, b


def pack_heads_for_kernel(params):
    """Pack heads (grouped by layer count) into fused transposed weights.

    Layer 0: concat heads along output rows -> (sum Cout, Cin).
    Layers >0: block-diagonal -> (sum Cout_l, sum Cout_{l-1}).
    Shifts: (sum Cout_l, 1). Returns one pack per group plus per-head slices.
    """
    groups = {}
    for head, layers in params.items():
        groups.setdefault(len(layers), []).append(head)

    packed = []
    for n_layers, head_names in sorted(groups.items()):
        # Heads sharing num_conv must share the BN/ReLU layer structure.
        ref_struct = [(l["bn"], l["relu"]) for l in params[head_names[0]]]
        for h in head_names:
            assert [(l["bn"], l["relu"]) for l in params[h]] == ref_struct, (
                "heads with equal num_conv must share BN/ReLU structure")
        relu_flags = [s[1] for s in ref_struct]

        folded = {h: [_fold_layer(l) for l in params[h]] for h in head_names}
        weights, shifts = [], []
        for li in range(n_layers):
            if li == 0:
                wt = jnp.concatenate([folded[h][0][0].T for h in head_names],
                                     axis=0)                      # (ΣCout, Cin)
            else:
                c_outs = [folded[h][li][0].shape[1] for h in head_names]
                c_ins = [folded[h][li][0].shape[0] for h in head_names]
                wt = jnp.zeros((sum(c_outs), sum(c_ins)), jnp.float32)
                ro = co = 0
                for h in head_names:
                    w_h = folded[h][li][0]                        # (cin, cout)
                    wt = wt.at[ro:ro + w_h.shape[1],
                               co:co + w_h.shape[0]].set(w_h.T)
                    ro += w_h.shape[1]
                    co += w_h.shape[0]
            st = jnp.concatenate([folded[h][li][1] for h in head_names])
            weights.append(wt.astype(jnp.float32))
            shifts.append(st.reshape(-1, 1).astype(jnp.float32))

        heads_meta, off = [], 0
        for h in head_names:
            classes = folded[h][-1][0].shape[1]
            heads_meta.append((h, off, classes))
            off += classes
        packed.append(dict(weights=weights, shifts=shifts, relu=relu_flags,
                           heads=heads_meta))
    return packed


# ---------------------------------------------------------------------------
# TaskHead forward: ONE fused pallas_call for all heads / all groups.
# ---------------------------------------------------------------------------
def taskhead_forward(x_nchw, packed, *, tm=1024, compute_dtype=jnp.float32):
    N, C, H, W = x_nchw.shape
    HW = H * W
    x3 = x_nchw.reshape(N, C, HW)      # contiguous reshape; x stays f32 in HBM

    # Pixel tile: large (amortize ~0.35us/step), lane dim multiple of 128.
    # No padding of x — ragged tail block is handled by Pallas OOB masking.
    tm = _round_up(max(tm, 128), 128)
    tm_eff = min(tm, _round_up(HW, 128))
    n_m = int(pl.cdiv(HW, tm_eff))
    if N * n_m < 2 and HW > 128:       # keep >=2 grid steps (v7x has 2 TCs)
        tm_eff = _round_up(int(pl.cdiv(HW, 2)), 128)
        n_m = int(pl.cdiv(HW, tm_eff))

    in_specs = [pl.BlockSpec((1, C, tm_eff), lambda n, m: (n, 0, m))]
    flat_args = []
    group_specs = []
    out_shapes, out_specs, head_order = [], [], []
    vmem_est = 2 * C * tm_eff * 4                        # x double buffer (f32)

    for group in packed:
        ws = [w.astype(compute_dtype) for w in group["weights"]]
        ss = group["shifts"]                             # f32 epilogue
        heads_meta = []
        for name, off, classes in group["heads"]:
            out_idx = len(out_shapes)
            head_order.append(name)
            out_shapes.append(jax.ShapeDtypeStruct((N, classes, HW),
                                                   jnp.float32))
            out_specs.append(pl.BlockSpec((1, classes, tm_eff),
                                          lambda n, m: (n, 0, m)))
            heads_meta.append((out_idx, off, classes))
            vmem_est += 2 * _round_up(classes, 8) * tm_eff * 4
        group_specs.append(dict(n_layers=len(ws), relu=tuple(group["relu"]),
                                heads=tuple(heads_meta)))
        for w in ws:
            flat_args.append(w)
            in_specs.append(pl.BlockSpec(w.shape, lambda n, m: (0, 0)))
            vmem_est += 2 * w.size * w.dtype.itemsize
        for s in ss:
            flat_args.append(s)
            in_specs.append(pl.BlockSpec(s.shape, lambda n, m: (0, 0)))
            vmem_est += 2 * s.size * 4
        vmem_est += max(w.shape[0] for w in ws) * tm_eff * 4   # layer intermediates

    # Scoped-VMEM limit: above the 16/32 MiB defaults, below v7x's 64 MiB.
    vmem_limit = int(min(max(2 * vmem_est, 32 * 1024 * 1024), 60 * 1024 * 1024))

    kern = functools.partial(
        _taskhead_fused_kernel, group_specs=tuple(group_specs),
        n_param_refs=len(flat_args), compute_dtype=compute_dtype)

    outs = pl.pallas_call(
        kern,
        out_shape=tuple(out_shapes),
        grid_spec=pltpu.PrefetchScalarGridSpec(
            num_scalar_prefetch=0,
            grid=(N, n_m),
            in_specs=in_specs,
            out_specs=tuple(out_specs)),
        compiler_params=pltpu.CompilerParams(
            dimension_semantics=("parallel", "parallel"),
            vmem_limit_bytes=vmem_limit),
    )(x3, *flat_args)

    ret = {}
    for name, o in zip(head_order, outs):
        ret[name] = o.reshape(N, o.shape[1], H, W)   # contiguous, no HBM copy
    return ret


# ---------------------------------------------------------------------------
# Pure-JAX reference (straight Conv1x1 -> BN(eval) -> ReLU per head, NHWC)
# ---------------------------------------------------------------------------
def taskhead_forward_ref(x_nchw, params):
    N, C, H, W = x_nchw.shape
    x2d = jnp.transpose(x_nchw, (0, 2, 3, 1)).reshape(N * H * W, C)
    ret = {}
    for head, layers in params.items():
        y = x2d
        for layer in layers:
            y = jnp.dot(y, layer["w"],
                        precision=jax.lax.Precision.HIGHEST) + layer["b"][None, :]
            if layer["bn"]:
                scale = layer["gamma"] / jnp.sqrt(layer["var"] + layer["eps"])
                shift = layer["beta"] - layer["mean"] * scale
                y = y * scale[None, :] + shift[None, :]
            if layer["relu"]:
                y = jnp.maximum(y, 0.0)
        classes = layers[-1]["w"].shape[1]
        ret[head] = jnp.transpose(y.reshape(N, H, W, classes), (0, 3, 1, 2))
    return ret


if __name__ == "__main__":
    # Small, consistent shapes (heads with num_conv=2 and 3 exercise grouping).
    N, C_IN, H, W = 2, 32, 16, 16
    HEAD_CONV = 32
    HEADS = {"heatmap": (2, 2), "reg": (2, 2), "dim": (3, 2), "rot": (2, 3)}

    key = jax.random.PRNGKey(0)
    key, xk = jax.random.split(key)
    x = jax.random.normal(xk, (N, C_IN, H, W), jnp.float32)

    params = make_taskhead_params(key, C_IN, HEADS, HEAD_CONV, init_bias=-2.19)
    packed = pack_heads_for_kernel(params)
    ref = taskhead_forward_ref(x, params)

    # f32 path — strict check against the unfolded reference.
    out = taskhead_forward(x, packed, tm=1024, compute_dtype=jnp.float32)
    out = jax.tree_util.tree_map(jax.block_until_ready, out)
    for head, (classes, _) in HEADS.items():
        assert out[head].shape == (N, classes, H, W), (head, out[head].shape)
        np.testing.assert_allclose(np.asarray(out[head]), np.asarray(ref[head]),
                                   rtol=1e-4, atol=1e-5)

    # Ragged spatial size + N=1: exercises the no-pad tail block and the
    # ">=2 grid steps" split (v7x megacore).
    key, xk2 = jax.random.split(key)
    x2 = jax.random.normal(xk2, (1, C_IN, 20, 20), jnp.float32)
    ref2 = taskhead_forward_ref(x2, params)
    out2 = taskhead_forward(x2, packed, tm=1024, compute_dtype=jnp.float32)
    out2 = jax.tree_util.tree_map(jax.block_until_ready, out2)
    for head in HEADS:
        np.testing.assert_allclose(np.asarray(out2[head]), np.asarray(ref2[head]),
                                   rtol=1e-4, atol=1e-5)

    # bf16 MXU path (weights bf16, x cast in-kernel, f32 acc/epilogue) — loose.
    out_bf16 = taskhead_forward(x, packed, tm=1024, compute_dtype=jnp.bfloat16)
    out_bf16 = jax.tree_util.tree_map(jax.block_until_ready, out_bf16)
    for head in HEADS:
        np.testing.assert_allclose(np.asarray(out_bf16[head]),
                                   np.asarray(ref[head]), rtol=1e-1, atol=1e-2)

    print("KERNEL_OK")
</pallas_src>

<mosaic_0001>
module attributes {stable_mosaic.version = 11 : i64} {
  func.func @_taskhead_fused_kernel(%arg0: i32, %arg1: i32, %arg2: memref<1x32x256xf32, #tpu.memory_space<vmem>>, %arg3: memref<96x32xf32, #tpu.memory_space<vmem>>, %arg4: memref<7x96xf32, #tpu.memory_space<vmem>>, %arg5: memref<96x1xf32, #tpu.memory_space<vmem>>, %arg6: memref<7x1xf32, #tpu.memory_space<vmem>>, %arg7: memref<32x32xf32, #tpu.memory_space<vmem>>, %arg8: memref<32x32xf32, #tpu.memory_space<vmem>>, %arg9: memref<2x32xf32, #tpu.memory_space<vmem>>, %arg10: memref<32x1xf32, #tpu.memory_space<vmem>>, %arg11: memref<32x1xf32, #tpu.memory_space<vmem>>, %arg12: memref<2x1xf32, #tpu.memory_space<vmem>>, %arg13: memref<1x2x256xf32, #tpu.memory_space<vmem>>, %arg14: memref<1x2x256xf32, #tpu.memory_space<vmem>>, %arg15: memref<1x3x256xf32, #tpu.memory_space<vmem>>, %arg16: memref<1x2x256xf32, #tpu.memory_space<vmem>>) attributes {dimension_semantics = [#tpu.dimension_semantics<parallel>, #tpu.dimension_semantics<parallel>], iteration_bounds = array<i64: 2, 1>, scalar_prefetch = 0 : i64, scratch_operands = 0 : i64, tpu.core_type = #tpu.core_type<tc>, window_params = [{transform_indices = @transform_0, window_bounds = array<i64: 1, 32, 256>}, {pipeline_mode = #tpu.pipeline_mode<synchronous>, transform_indices = @transform_1, window_bounds = array<i64: 96, 32>}, {pipeline_mode = #tpu.pipeline_mode<synchronous>, transform_indices = @transform_2, window_bounds = array<i64: 7, 96>}, {pipeline_mode = #tpu.pipeline_mode<synchronous>, transform_indices = @transform_3, window_bounds = array<i64: 96, 1>}, {pipeline_mode = #tpu.pipeline_mode<synchronous>, transform_indices = @transform_4, window_bounds = array<i64: 7, 1>}, {pipeline_mode = #tpu.pipeline_mode<synchronous>, transform_indices = @transform_5, window_bounds = array<i64: 32, 32>}, {pipeline_mode = #tpu.pipeline_mode<synchronous>, transform_indices = @transform_6, window_bounds = array<i64: 32, 32>}, {pipeline_mode = #tpu.pipeline_mode<synchronous>, transform_indices = @transform_7, window_bounds = array<i64: 2, 32>}, {pipeline_mode = #tpu.pipeline_mode<synchronous>, transform_indices = @transform_8, window_bounds = array<i64: 32, 1>}, {pipeline_mode = #tpu.pipeline_mode<synchronous>, transform_indices = @transform_9, window_bounds = array<i64: 32, 1>}, {pipeline_mode = #tpu.pipeline_mode<synchronous>, transform_indices = @transform_10, window_bounds = array<i64: 2, 1>}, {transform_indices = @transform_11, window_bounds = array<i64: 1, 2, 256>}, {transform_indices = @transform_12, window_bounds = array<i64: 1, 2, 256>}, {transform_indices = @transform_13, window_bounds = array<i64: 1, 3, 256>}, {transform_indices = @transform_14, window_bounds = array<i64: 1, 2, 256>}]} {
    %c0 = arith.constant 0 : index
    %c0_0 = arith.constant 0 : index
    %c0_1 = arith.constant 0 : index
    %0 = vector.load %arg2[%c0, %c0_0, %c0_1] : memref<1x32x256xf32, #tpu.memory_space<vmem>>, vector<1x32x256xf32>
    %1 = vector.shape_cast %0 : vector<1x32x256xf32> to vector<32x256xf32>
    %c0_2 = arith.constant 0 : index
    %c0_3 = arith.constant 0 : index
    %2 = vector.load %arg3[%c0_2, %c0_3] : memref<96x32xf32, #tpu.memory_space<vmem>>, vector<96x32xf32>
    %cst = arith.constant dense<0.000000e+00> : vector<96x256xf32>
    %3 = tpu.matmul %2, %1, %cst {dimension_numbers = #tpu.dot_dimension_numbers<[1], [0], [0], [1], [0, 0, 1, 1], [], []>} : vector<96x32xf32>, vector<32x256xf32>, vector<96x256xf32> -> vector<96x256xf32>
    %c0_4 = arith.constant 0 : index
    %c0_5 = arith.constant 0 : index
    %4 = vector.load %arg5[%c0_4, %c0_5] : memref<96x1xf32, #tpu.memory_space<vmem>>, vector<96x1xf32>
    %5 = vector.broadcast %4 : vector<96x1xf32> to vector<96x256xf32>
    %6 = arith.addf %3, %5 : vector<96x256xf32>
    %cst_6 = arith.constant 0.000000e+00 : f32
    %7 = vector.broadcast %cst_6 : f32 to vector<96x256xf32>
    %8 = arith.maximumf %6, %7 : vector<96x256xf32>
    %c0_7 = arith.constant 0 : index
    %c0_8 = arith.constant 0 : index
    %9 = vector.load %arg4[%c0_7, %c0_8] : memref<7x96xf32, #tpu.memory_space<vmem>>, vector<7x96xf32>
    %cst_9 = arith.constant dense<0.000000e+00> : vector<7x256xf32>
    %10 = tpu.matmul %9, %8, %cst_9 {dimension_numbers = #tpu.dot_dimension_numbers<[1], [0], [0], [1], [0, 0, 1, 1], [], []>} : vector<7x96xf32>, vector<96x256xf32>, vector<7x256xf32> -> vector<7x256xf32>
    %c0_10 = arith.constant 0 : index
    %c0_11 = arith.constant 0 : index
    %11 = vector.load %arg6[%c0_10, %c0_11] : memref<7x1xf32, #tpu.memory_space<vmem>>, vector<7x1xf32>
    %12 = vector.broadcast %11 : vector<7x1xf32> to vector<7x256xf32>
    %13 = arith.addf %10, %12 : vector<7x256xf32>
    %14 = vector.extract_strided_slice %13 {offsets = [0, 0], sizes = [2, 256], strides = [1, 1]} : vector<7x256xf32> to vector<2x256xf32>
    %c0_12 = arith.constant 0 : index
    %c0_13 = arith.constant 0 : index
    %c0_14 = arith.constant 0 : index
    %15 = vector.load %arg13[%c0_12, %c0_13, %c0_14] : memref<1x2x256xf32, #tpu.memory_space<vmem>>, vector<1x2x256xf32>
    %16 = vector.shape_cast %15 : vector<1x2x256xf32> to vector<2x256xf32>
    %17 = vector.shape_cast %14 : vector<2x256xf32> to vector<1x2x256xf32>
    tpu.vector_store %arg13[%c0_12, %c0_13, %c0_14], %17 {strides = array<i32>} : memref<1x2x256xf32, #tpu.memory_space<vmem>>, vector<1x2x256xf32>,
    %18 = vector.extract_strided_slice %13 {offsets = [2, 0], sizes = [2, 256], strides = [1, 1]} : vector<7x256xf32> to vector<2x256xf32>
    %c0_15 = arith.constant 0 : index
    %c0_16 = arith.constant 0 : index
    %c0_17 = arith.constant 0 : index
    %19 = vector.load %arg14[%c0_15, %c0_16, %c0_17] : memref<1x2x256xf32, #tpu.memory_space<vmem>>, vector<1x2x256xf32>
    %20 = vector.shape_cast %19 : vector<1x2x256xf32> to vector<2x256xf32>
    %21 = vector.shape_cast %18 : vector<2x256xf32> to vector<1x2x256xf32>
    tpu.vector_store %arg14[%c0_15, %c0_16, %c0_17], %21 {strides = array<i32>} : memref<1x2x256xf32, #tpu.memory_space<vmem>>, vector<1x2x256xf32>,
    %22 = vector.extract_strided_slice %13 {offsets = [4, 0], sizes = [3, 256], strides = [1, 1]} : vector<7x256xf32> to vector<3x256xf32>
    %c0_18 = arith.constant 0 : index
    %c0_19 = arith.constant 0 : index
    %c0_20 = arith.constant 0 : index
    %23 = vector.load %arg15[%c0_18, %c0_19, %c0_20] : memref<1x3x256xf32, #tpu.memory_space<vmem>>, vector<1x3x256xf32>
    %24 = vector.shape_cast %23 : vector<1x3x256xf32> to vector<3x256xf32>
    %25 = vector.shape_cast %22 : vector<3x256xf32> to vector<1x3x256xf32>
    tpu.vector_store %arg15[%c0_18, %c0_19, %c0_20], %25 {strides = array<i32>} : memref<1x3x256xf32, #tpu.memory_space<vmem>>, vector<1x3x256xf32>,
    %c0_21 = arith.constant 0 : index
    %c0_22 = arith.constant 0 : index
    %26 = vector.load %arg7[%c0_21, %c0_22] : memref<32x32xf32, #tpu.memory_space<vmem>>, vector<32x32xf32>
    %cst_23 = arith.constant dense<0.000000e+00> : vector<32x256xf32>
    %27 = tpu.matmul %26, %1, %cst_23 {dimension_numbers = #tpu.dot_dimension_numbers<[1], [0], [0], [1], [0, 0, 1, 1], [], []>} : vector<32x32xf32>, vector<32x256xf32>, vector<32x256xf32> -> vector<32x256xf32>
    %c0_24 = arith.constant 0 : index
    %c0_25 = arith.constant 0 : index
    %28 = vector.load %arg10[%c0_24, %c0_25] : memref<32x1xf32, #tpu.memory_space<vmem>>, vector<32x1xf32>
    %29 = vector.broadcast %28 : vector<32x1xf32> to vector<32x256xf32>
    %30 = arith.addf %27, %29 : vector<32x256xf32>
    %cst_26 = arith.constant 0.000000e+00 : f32
    %31 = vector.broadcast %cst_26 : f32 to vector<32x256xf32>
    %32 = arith.maximumf %30, %31 : vector<32x256xf32>
    %c0_27 = arith.constant 0 : index
    %c0_28 = arith.constant 0 : index
    %33 = vector.load %arg8[%c0_27, %c0_28] : memref<32x32xf32, #tpu.memory_space<vmem>>, vector<32x32xf32>
    %cst_29 = arith.constant dense<0.000000e+00> : vector<32x256xf32>
    %34 = tpu.matmul %33, %32, %cst_29 {dimension_numbers = #tpu.dot_dimension_numbers<[1], [0], [0], [1], [0, 0, 1, 1], [], []>} : vector<32x32xf32>, vector<32x256xf32>, vector<32x256xf32> -> vector<32x256xf32>
    %c0_30 = arith.constant 0 : index
    %c0_31 = arith.constant 0 : index
    %35 = vector.load %arg11[%c0_30, %c0_31] : memref<32x1xf32, #tpu.memory_space<vmem>>, vector<32x1xf32>
    %36 = vector.broadcast %35 : vector<32x1xf32> to vector<32x256xf32>
    %37 = arith.addf %34, %36 : vector<32x256xf32>
    %cst_32 = arith.constant 0.000000e+00 : f32
    %38 = vector.broadcast %cst_32 : f32 to vector<32x256xf32>
    %39 = arith.maximumf %37, %38 : vector<32x256xf32>
    %c0_33 = arith.constant 0 : index
    %c0_34 = arith.constant 0 : index
    %40 = vector.load %arg9[%c0_33, %c0_34] : memref<2x32xf32, #tpu.memory_space<vmem>>, vector<2x32xf32>
    %cst_35 = arith.constant dense<0.000000e+00> : vector<2x256xf32>
    %41 = tpu.matmul %40, %39, %cst_35 {dimension_numbers = #tpu.dot_dimension_numbers<[1], [0], [0], [1], [0, 0, 1, 1], [], []>} : vector<2x32xf32>, vector<32x256xf32>, vector<2x256xf32> -> vector<2x256xf32>
    %c0_36 = arith.constant 0 : index
    %c0_37 = arith.constant 0 : index
    %42 = vector.load %arg12[%c0_36, %c0_37] : memref<2x1xf32, #tpu.memory_space<vmem>>, vector<2x1xf32>
    %43 = vector.broadcast %42 : vector<2x1xf32> to vector<2x256xf32>
    %44 = arith.addf %41, %43 : vector<2x256xf32>
    %c0_38 = arith.constant 0 : index
    %c0_39 = arith.constant 0 : index
    %c0_40 = arith.constant 0 : index
    %45 = vector.load %arg16[%c0_38, %c0_39, %c0_40] : memref<1x2x256xf32, #tpu.memory_space<vmem>>, vector<1x2x256xf32>
    %46 = vector.shape_cast %45 : vector<1x2x256xf32> to vector<2x256xf32>
    %47 = vector.shape_cast %44 : vector<2x256xf32> to vector<1x2x256xf32>
    tpu.vector_store %arg16[%c0_38, %c0_39, %c0_40], %47 {strides = array<i32>} : memref<1x2x256xf32, #tpu.memory_space<vmem>>, vector<1x2x256xf32>,
    return
  }
  func.func @transform_0(%arg0: i32, %arg1: i32) -> (i32, i32, i32) {
    %c0_i32 = arith.constant 0 : i32
    %c0_i32_0 = arith.constant 0 : i32
    return %arg0, %c0_i32, %arg1 : i32, i32, i32
  }
  func.func @transform_1(%arg0: i32, %arg1: i32) -> (i32, i32) {
    %c0_i32 = arith.constant 0 : i32
    %c0_i32_0 = arith.constant 0 : i32
    %c0_i32_1 = arith.constant 0 : i32
    return %c0_i32, %c0_i32_0 : i32, i32
  }
  func.func @transform_2(%arg0: i32, %arg1: i32) -> (i32, i32) {
    %c0_i32 = arith.constant 0 : i32
    %c0_i32_0 = arith.constant 0 : i32
    %c0_i32_1 = arith.constant 0 : i32
    return %c0_i32, %c0_i32_0 : i32, i32
  }
  func.func @transform_3(%arg0: i32, %arg1: i32) -> (i32, i32) {
    %c0_i32 = arith.constant 0 : i32
    %c0_i32_0 = arith.constant 0 : i32
    %c0_i32_1 = arith.constant 0 : i32
    return %c0_i32, %c0_i32_0 : i32, i32
  }
  func.func @transform_4(%arg0: i32, %arg1: i32) -> (i32, i32) {
    %c0_i32 = arith.constant 0 : i32
    %c0_i32_0 = arith.constant 0 : i32
    %c0_i32_1 = arith.constant 0 : i32
    return %c0_i32, %c0_i32_0 : i32, i32
  }
  func.func @transform_5(%arg0: i32, %arg1: i32) -> (i32, i32) {
    %c0_i32 = arith.constant 0 : i32
    %c0_i32_0 = arith.constant 0 : i32
    %c0_i32_1 = arith.constant 0 : i32
    return %c0_i32, %c0_i32_0 : i32, i32
  }
  func.func @transform_6(%arg0: i32, %arg1: i32) -> (i32, i32) {
    %c0_i32 = arith.constant 0 : i32
    %c0_i32_0 = arith.constant 0 : i32
    %c0_i32_1 = arith.constant 0 : i32
    return %c0_i32, %c0_i32_0 : i32, i32
  }
  func.func @transform_7(%arg0: i32, %arg1: i32) -> (i32, i32) {
    %c0_i32 = arith.constant 0 : i32
    %c0_i32_0 = arith.constant 0 : i32
    %c0_i32_1 = arith.constant 0 : i32
    return %c0_i32, %c0_i32_0 : i32, i32
  }
  func.func @transform_8(%arg0: i32, %arg1: i32) -> (i32, i32) {
    %c0_i32 = arith.constant 0 : i32
    %c0_i32_0 = arith.constant 0 : i32
    %c0_i32_1 = arith.constant 0 : i32
    return %c0_i32, %c0_i32_0 : i32, i32
  }
  func.func @transform_9(%arg0: i32, %arg1: i32) -> (i32, i32) {
    %c0_i32 = arith.constant 0 : i32
    %c0_i32_0 = arith.constant 0 : i32
    %c0_i32_1 = arith.constant 0 : i32
    return %c0_i32, %c0_i32_0 : i32, i32
  }
  func.func @transform_10(%arg0: i32, %arg1: i32) -> (i32, i32) {
    %c0_i32 = arith.constant 0 : i32
    %c0_i32_0 = arith.constant 0 : i32
    %c0_i32_1 = arith.constant 0 : i32
    return %c0_i32, %c0_i32_0 : i32, i32
  }
  func.func @transform_11(%arg0: i32, %arg1: i32) -> (i32, i32, i32) {
    %c0_i32 = arith.constant 0 : i32
    %c0_i32_0 = arith.constant 0 : i32
    return %arg0, %c0_i32, %arg1 : i32, i32, i32
  }
  func.func @transform_12(%arg0: i32, %arg1: i32) -> (i32, i32, i32) {
    %c0_i32 = arith.constant 0 : i32
    %c0_i32_0 = arith.constant 0 : i32
    return %arg0, %c0_i32, %arg1 : i32, i32, i32
  }
  func.func @transform_13(%arg0: i32, %arg1: i32) -> (i32, i32, i32) {
    %c0_i32 = arith.constant 0 : i32
    %c0_i32_0 = arith.constant 0 : i32
    return %arg0, %c0_i32, %arg1 : i32, i32, i32
  }
  func.func @transform_14(%arg0: i32, %arg1: i32) -> (i32, i32, i32) {
    %c0_i32 = arith.constant 0 : i32
    %c0_i32_0 = arith.constant 0 : i32
    return %arg0, %c0_i32, %arg1 : i32, i32, i32
  }
}

</mosaic_0001>

<bundles_post_ra>
// kernel: tpu_custom_call.1
= control target key start
LH: loop header
LB: loop body
LE: loop exit
PB: predicated region body
PF: predicated region fallthrough
CT: control target
= control target key end

     0   :  { %s2159_s0 = inlined_call_operand.vmem [shape: f32[2,32,256], index: 0, kind: input, shape index: {}]   ;;  %s2160_s1 = inlined_call_operand.vmem [shape: f32[96,32], index: 1, kind: input, shape index: {}]   ;;  %s2161_s2 = inlined_call_operand.vmem [shape: f32[7,96], index: 2, kind: input, shape index: {}]   ;;  %s2162_s3 = inlined_call_operand.vmem [shape: f32[96,1], index: 3, kind: input, shape index: {}]   ;;  %s2163_s4 = inlined_call_operand.vmem [shape: f32[7,1], index: 4, kind: input, shape index: {}]   ;;  %s2164_s5 = inlined_call_operand.vmem [shape: f32[32,32], index: 5, kind: input, shape index: {}]   ;;  %s2165_s6 = inlined_call_operand.vmem [shape: f32[32,32], index: 6, kind: input, shape index: {}]   ;;  %s2166_s7 = inlined_call_operand.vmem [shape: f32[2,32], index: 7, kind: input, shape index: {}]   ;;  %s2167_s8 = inlined_call_operand.vmem [shape: f32[32,1], index: 8, kind: input, shape index: {}]   ;;  %s2168_s9 = inlined_call_operand.vmem [shape: f32[32,1], index: 9, kind: input, shape index: {}]   ;;  %s2169_s10 = inlined_call_operand.vmem [shape: f32[2,1], index: 10, kind: input, shape index: {}]   ;;  %s2170_s11 = inlined_call_operand.hbm [shape: f32[2,2,256], index: 11, kind: output, shape index: {0}]   ;;  %s2171_s12 = inlined_call_operand.hbm [shape: f32[2,2,256], index: 12, kind: output, shape index: {1}]   ;;  %s2172_s13 = inlined_call_operand.vmem [shape: f32[2,3,256], index: 13, kind: output, shape index: {2}]   ;;  %s2173_s14 = inlined_call_operand.hbm [shape: f32[2,2,256], index: 14, kind: output, shape index: {3}]  }
   0x1   :  { %2181 = sst [smem:[#allocation12_spill]] %s2159_s0 }
   0x2   :  { %2182 = sst [smem:[#allocation13_spill]] %s2160_s1 }
   0x3   :  { %2183 = sst [smem:[#allocation14_spill]] %s2161_s2 }
   0x4   :  { %2184 = sst [smem:[#allocation15_spill]] %s2162_s3 }
   0x5   :  { %2185 = sst [smem:[#allocation16_spill]] %s2163_s4 }
   0x6   :  { %2186 = sst [smem:[#allocation17_spill]] %s2164_s5 }
   0x7   :  { %2187 = sst [smem:[#allocation18_spill]] %s2165_s6 }
   0x8   :  { %20 = vsyncpa [#allocation3], 0 }
   0x9   :  { %22 = vsyncpa [#allocation3 + $0x1], 0 }
   0xa   :  { %23 = vsyncpa [#allocation5], 0 }
   0xb   :  { %25 = vsyncpa [#allocation5 + $0x1], 0  ;;  %s1756_s29 = smov 0   ;;  %s1758_s30 = smov 0  }
   0xc   :  { %s1760_s15 = smov 0   ;;  %s1762_s16 = smov 0  }
   0xd   :  { %s1764_s17 = smov 0   ;;  %s1766_s18 = smov 0  }
   0xe LB: > { %2188 = sst [smem:[#allocation9_spill]] %s1674_s17  ;;  %s2175_s19 = sadd.s32 4294967295, %s1678_s18   ;;  %s1678_s18 = sphi %s1766_s18, %s31_s18   ;;  %s1674_s17 = sphi %s1764_s17, %s2207_s17   ;;  %s1670_s16 = sphi %s1762_s16, %s2206_s16   ;;  %s1666_s15 = sphi %s1760_s15, %s2210_s15   ;;  %s1662_s30 = sphi %s1758_s30, %s2209_s30   ;;  %s1658_s29 = sphi %s1756_s29, %s2208_s29  }
   0xf   : > { %s2174_s20 = sadd.s32 4294967294, %s1678_s18   ;;  %s43_s21 = sadd.s32 1, %s1674_s17 }
  0x10   : > { %s290_s22 = sadd.s32 1, %s1666_s15  ;;  %p45_p0 = scmp.ge.s32.totalorder %s43_s21, 2 }
  0x11   : > { %p300_p1 = scmp.ne.s32.totalorder %s1666_s15, %s1662_s30  ;;  %p301_p2 = scmp.eq.s32.totalorder %s2175_s19, 1 }
  0x12   : > { %p306_p3 = scmp.ne.s32.totalorder %s1662_s30, %s1658_s29  ;;  %s2212_s21 = smov (%p45_p0, %s43_s21), 0 }
  0x13   : > { %2189 = sst [smem:[#allocation10_spill]] %s2212_s21  ;;  %p1798_p4 = por %p301_p2, %p300_p1 }
  0x14   : > { %p307_p5 = scmp.eq.s32.totalorder %s2174_s20, 1  ;;  %s285_s24 = ssub.s32 %s1674_s17, %s2212_s21 }
  0x15   : > { %p1403_p6 = scmp.ge.s32.totalorder %s1678_s18, 1  ;;  %p288_p7 = scmp.eq.s32.totalorder %s285_s24, 0 }
  0x16   : > { %p1807_p8 = por %p307_p5, %p306_p3  ;;  %p452_p9 = scmp.lt.s32.totalorder %s1678_s18, 3 }
  0x17   : > { %s1813_s26 = scalar_select %p288_p7, %s1666_s15, %s290_s22  }
  0x18   : > { %p453_p10 = pnand %p1403_p6, %p452_p9 }
  0x19   : > { %2192 = sst [smem:[#allocation11_spill]] %s1813_s26  ;;  %p522_p11 = scmp.lt.s32.totalorder (!%p453_p10), %s1670_s16, 1 }
  0x1a   : > { %456 = sbr.rel (%p453_p10) target bundleno = 767 (0x2ff), region = 64  ;;  %s2193_s3 = sld [smem:[#allocation15_spill]] (!%p453_p10) }
  0x1b   : > { %s2194_s0 = sld [smem:[#allocation12_spill]] (!%p453_p10)  ;;  %s2200_s26 = sadd.s32 (!%p453_p10), 4294967295, %s1678_s18  }
  0x1c   : > { %s2195_s1 = sld [smem:[#allocation13_spill]] (!%p453_p10) }
  0x1d   : > { %s2196_s4 = sld [smem:[#allocation16_spill]] (!%p453_p10) }
  0x1e   : > { %s2197_s2 = sld [smem:[#allocation14_spill]] (!%p453_p10) }
  0x1f   : > { %v1680_v2 = vmov 0   ;;  %s1823_s24 = scalar_select %p522_p11, %s1670_s16, 1  ;;  %vm636_vm0 = vcmask 261120   ;;  %v880_v26 = vld [vmem:[%s2167_s8 + $0x18] sm:$0xff]  ;;  %v877_v28 = vld [vmem:[%s2167_s8] sm:$0xff]  ;;  %v879_v29 = vld [vmem:[%s2167_s8 + $0x10] sm:$0xff] }
  0x20   : > { %v573_v0 = vld [vmem:[%s2193_s3 + $0x48] sm:$0xff]  ;;  %v575_v1 = vld [vmem:[%s2193_s3 + $0x58] sm:$0xff]  ;;  %1538 = vset.pattern.permute.xlu1 %v1680_v2  ;;  %1537 = vset.pattern.permute.xlu0 %v1680_v2  ;;  %v572_v8 = vld [vmem:[%s2193_s3 + $0x40] sm:$0xff]  ;;  %vm810_vm1 = vcmask 785408   ;;  %s2198_s5 = sld [smem:[#allocation17_spill]]  ;;  %vm857_vm2 = vcmask 1041408  }
  0x21   : > { %623 = vperm.xlu1 %1538, %v573_v0   ;;  %633 = vperm.xlu0 %1537, %v575_v1   ;;  %v571_v3 = vld [vmem:[%s2193_s3 + $0x38] sm:$0xff]  ;;  %s1466_s17 = sshll.u32 %s1823_s24, 6  ;;  %v574_v9 = vld [vmem:[%s2193_s3 + $0x50] sm:$0xff]  ;;  %v568_v16 = vld [vmem:[%s2193_s3 + $0x20] sm:$0xff]  ;;  %s2199_s6 = sld [smem:[#allocation18_spill]] }
  0x22   : > { %1539 = vset.pattern.permute.xlu2 %v1680_v2  ;;  %s529_s19 = scalar_lea.vmem %s2194_s0, %s1466_s17  ;;  %v570_v12 = vld [vmem:[%s2193_s3 + $0x30] sm:$0xff]  ;;  %v552_v15 = vld [vmem:[%s2195_s1] sm:$0xff]  ;;  %v569_v17 = vld [vmem:[%s2193_s3 + $0x28] sm:$0xff]  ;;  %s1467_s17 = sshll.u32 %s1823_s24, 3 }
  0x23   : > { %613 = vperm.xlu2 %1539, %v571_v3   ;;  %v1832_v4 = vld [vmem:[%s529_s19 + $0x30] sm:$0xff]  ;;  %v1834_v5 = vld [vmem:[%s529_s19 + $0x38] sm:$0xff]  ;;  %v1836_v6 = vld [vmem:[%s529_s19 + $0x20] sm:$0xff]  ;;  %s541_s28 = scalar_lea.vmem %s2172_s13, %s1467_s17  ;;  %s2078_s24 = sshll.u32 %s1670_s16, 2 }
  0x24   : > { %685 = vmatpush.msra.mxu0 %v1832_v4  ;;  %738 = vmatpush.msra.mxu1 %v1834_v5  ;;  %v1840_v7 = vld [vmem:[%s529_s19 + $0x28] sm:$0xff]  ;;  %v1848_v10 = vld [vmem:[%s529_s19 + $0x10] sm:$0xff]  ;;  %v1850_v11 = vld [vmem:[%s529_s19 + $0x18] sm:$0xff] }
  0x25   : > { %v1857_v13 = vld [vmem:[%s529_s19] sm:$0xff]  ;;  %v1859_v14 = vld [vmem:[%s529_s19 + $0x8] sm:$0xff]  ;;  %v567_v18 = vld [vmem:[%s2193_s3 + $0x18] sm:$0xff]  ;;  %s2178_s19 = sand.u32 1, %s1662_s30  }
  0x26   : > { %686 = vmatpush.msra.mxu0 %v1836_v6  ;;  %739 = vmatpush.msra.mxu1 %v1840_v7  ;;  %v553_v19 = vld [vmem:[%s2195_s1 + $0x8] sm:$0xff]  ;;  %v566_v21 = vld [vmem:[%s2193_s3 + $0x10] sm:$0xff]  ;;  %v564_v22 = vld [vmem:[%s2193_s3] sm:$0xff]  ;;  %s2033_s20 = sshll.u32 %s2178_s19, 2 }
  0x27   : > { %v565_v20 = vld [vmem:[%s2193_s3 + $0x8] sm:$0xff]  ;;  %v554_v23 = vld [vmem:[%s2195_s1 + $0x10] sm:$0xff]  ;;  %v555_v24 = vld [vmem:[%s2195_s1 + $0x18] sm:$0xff]  ;;  %s2179_s21 = scalar_lea.vmem [#allocation2], %s2033_s20  ;;  %s2180_s22 = scalar_lea.vmem [#allocation4], %s2033_s20 }
  0x28   : > { %687 = vmatpush.msra.mxu0 %v1848_v10  ;;  %740 = vmatpush.msra.mxu1 %v1850_v11  ;;  %v556_v25 = vld [vmem:[%s2195_s1 + $0x20] sm:$0xff]  ;;  %v557_v27 = vld [vmem:[%s2195_s1 + $0x28] sm:$0xff]  ;;  %v558_v30 = vld [vmem:[%s2195_s1 + $0x30] sm:$0xff]  ;;  %s2201_s19 = scalar_lea.vmem [#allocation4], %s2033_s20 }
  0x29   : > { %618 = vperm.xlu1 %1538, %v572_v8   ;;  %628 = vperm.xlu0 %1537, %v574_v9   ;;  %v984_v31 = vld [vmem:[%s2168_s9 + $0x8] sm:$0xff]  ;;  %v986_v32 = vld [vmem:[%s2168_s9 + $0x18] sm:$0xff]  ;;  %v1086_v34 = vld [vmem:[%s2169_s10] sm:$0x3]  ;;  %s1193_s27 = sshll.u32 %s2201_s19, 4  ;;  %s1194_s27 = int_to_ptr.vmem [resolvable:$true] %s1193_s27 }
  0x2a   : > { %688 = vmatpush.msra.mxu0 %v1857_v13  ;;  %741 = vmatpush.msra.mxu1 %v1859_v14  ;;  %v559_v33 = vld [vmem:[%s2195_s1 + $0x38] sm:$0xff]  ;;  %v983_v35 = vld [vmem:[%s2168_s9] sm:$0xff]  ;;  %v878_v36 = vld [vmem:[%s2167_s8 + $0x8] sm:$0xff] }
  0x2b   : > { %608 = vperm.xlu2 %1539, %v570_v12   ;;  %1411 = vmatmul.msk.f32.vlgmr.msra.gmra.mxu0 %vm636_vm0, %v552_v15  ;;  %v560_v37 = vld [vmem:[%s2195_s1 + $0x40] sm:$0xff]  ;;  %v561_v38 = vld [vmem:[%s2195_s1 + $0x48] sm:$0xff]  ;;  %v985_v39 = vld [vmem:[%s2168_s9 + $0x10] sm:$0xff] }
  0x2c   : > { %1423 = vmatmul.msk.f32.vlgmr.msra.gmra.mxu1 %vm636_vm0, %v552_v15  ;;  %v562_v40 = vld [vmem:[%s2195_s1 + $0x50] sm:$0xff]  ;;  %v804_v41 = vld [vmem:[%s2196_s4] sm:$0x7f]  ;;  %v563_v42 = vld [vmem:[%s2195_s1 + $0x58] sm:$0xff]  ;;  %s1560_s4 = scalar_lea.hbm %s2171_s12, 8 }
  0x31   : > { %598 = vperm.xlu1 %1538, %v568_v16   ;;  %603 = vperm.xlu0 %1537, %v569_v17  }
  0x33   : > { %593 = vperm.xlu2 %1539, %v567_v18   ;;  %1412 = vmatmul.msk.f32.gmra.mxu0 %vm636_vm0, %v553_v19 }
  0x34   : > { %1424 = vmatmul.msk.f32.gmra.mxu1 %vm636_vm0, %v553_v19 }
  0x39   : > { %583 = vperm.xlu1 %1538, %v565_v20   ;;  %588 = vperm.xlu0 %1537, %v566_v21  }
  0x3b   : > { %578 = vperm.xlu2 %1539, %v564_v22   ;;  %1413 = vmatmul.msk.f32.gmra.mxu0 %vm636_vm0, %v554_v23 }
  0x3c   : > { %1425 = vmatmul.msk.f32.gmra.mxu1 %vm636_vm0, %v554_v23 }
  0x41   : > { %898 = vperm.xlu0 %1537, %v880_v26   ;;  %893 = vperm.xlu1 %1538, %v879_v29  }
  0x43   : > { %1414 = vmatmul.msk.f32.gmra.mxu0 %vm636_vm0, %v555_v24  ;;  %888 = vperm.xlu2 %1539, %v878_v36  }
  0x44   : > { %1426 = vmatmul.msk.f32.gmra.mxu1 %vm636_vm0, %v555_v24 }
  0x49   : > { %883 = vperm.xlu0 %1537, %v877_v28   ;;  %1004 = vperm.xlu1 %1538, %v986_v32  }
  0x4b   : > { %1415 = vmatmul.msk.f32.gmra.mxu0 %vm636_vm0, %v556_v25  ;;  %999 = vperm.xlu2 %1539, %v985_v39  }
  0x4c   : > { %1427 = vmatmul.msk.f32.gmra.mxu1 %vm636_vm0, %v556_v25 }
  0x51   : > { %994 = vperm.xlu0 %1537, %v984_v31   ;;  %989 = vperm.xlu1 %1538, %v983_v35  }
  0x53   : > { %1416 = vmatmul.msk.f32.gmra.mxu0 %vm636_vm0, %v557_v27  ;;  %807 = vperm.xlu2 %1539, %v804_v41  }
  0x54   : > { %1428 = vmatmul.msk.f32.gmra.mxu1 %vm636_vm0, %v557_v27 }
  0x59   : > { %1089 = vperm.xlu0 %1537, %v1086_v34  }
  0x5b   : > { %1417 = vmatmul.msk.f32.gmra.mxu0 %vm636_vm0, %v558_v30 }
  0x5c   : > { %1429 = vmatmul.msk.f32.gmra.mxu1 %vm636_vm0, %v558_v30 }
  0x63   : > { %1418 = vmatmul.msk.f32.gmra.mxu0 %vm636_vm0, %v559_v33 }
  0x64   : > { %1430 = vmatmul.msk.f32.gmra.mxu1 %vm636_vm0, %v559_v33 }
  0x6b   : > { %1419 = vmatmul.msk.f32.gmra.mxu0 %vm636_vm0, %v560_v37 }
  0x6c   : > { %1431 = vmatmul.msk.f32.gmra.mxu1 %vm636_vm0, %v560_v37 }
  0x73   : > { %1420 = vmatmul.msk.f32.gmra.mxu0 %vm636_vm0, %v561_v38 }
  0x74   : > { %1432 = vmatmul.msk.f32.gmra.mxu1 %vm636_vm0, %v561_v38 }
  0x7b   : > { %1421 = vmatmul.msk.f32.gmra.mxu0 %vm636_vm0, %v562_v40 }
  0x7c   : > { %1433 = vmatmul.msk.f32.gmra.mxu1 %vm636_vm0, %v562_v40 }
  0x7d   : > { %v614_v1 = vpop.permute.xlu2 %613 }
  0x83   : > { %1422 = vmatmul.msk.f32.gmra.mxu0 %vm636_vm0, %v563_v42 }
  0x84   : > { %1434 = vmatmul.msk.f32.gmra.mxu1 %vm636_vm0, %v563_v42 }
  0x85   : > { %v609_v12 = vpop.permute.xlu2 %608 }
  0x8d   : > { %v594_v35 = vpop.permute.xlu2 %593 }
  0x93   : > { %v634_v61 = vpop.permute.xlu0 %633  ;;  %v624_v0 = vpop.permute.xlu1 %623 }
  0x9b   : > { %v629_v8 = vpop.permute.xlu0 %628  ;;  %v619_v9 = vpop.permute.xlu1 %618 }
  0xa3   : > { %v604_v25 = vpop.permute.xlu0 %603  ;;  %v599_v30 = vpop.permute.xlu1 %598 }
  0xa8   : > { %v1973_v43 = vpop.f32.mrf.mxu0 }
  0xa9   : > { %v1975_v44 = vpop.f32.mrf.mxu1 }
  0xb0   : > { %v1977_v45 = vpop.f32.mrf.mxu0 }
  0xb1   : > { %v1979_v46 = vpop.f32.mrf.mxu1 }
  0xb8   : > { %v1981_v47 = vpop.f32.mrf.mxu0 }
  0xb9   : > { %v1983_v48 = vpop.f32.mrf.mxu1 }
  0xc0   : > { %v1985_v49 = vpop.f32.mrf.mxu0 }
  0xc1   : > { %v1987_v50 = vpop.f32.mrf.mxu1 }
  0xc8   : > { %v702_v51 = vpop.f32.mrf.mxu0 }
  0xc9   : > { %v755_v52 = vpop.f32.mrf.mxu1 }
  0xd0   : > { %v705_v53 = vpop.f32.mrf.mxu0 }
  0xd1   : > { %v758_v54 = vpop.f32.mrf.mxu1  ;;  %v706_v40 = vadd.f32 %v705_v53, %v604_v25  ;;  %v584_v53 = vpop.permute.xlu1 %583 }
  0xd2   : > { %v759_v41 = vadd.f32 %v758_v54, %v604_v25 }
  0xd8   : > { %v708_v55 = vpop.f32.mrf.mxu0 }
  0xd9   : > { %v761_v56 = vpop.f32.mrf.mxu1  ;;  %v709_v36 = vadd.f32 %v708_v55, %v609_v12  ;;  %v700_v55 = vadd.f32 %v1985_v49, %v594_v35  ;;  %v747_v49 = vadd.f32 %v1979_v46, %v584_v53  ;;  %v803_v46 = vld [vmem:[%s2197_s2] sm:$0x7f] }
  0xda   : > { %v762_v37 = vadd.f32 %v761_v56, %v609_v12  ;;  %v753_v56 = vadd.f32 %v1987_v50, %v594_v35 }
  0xdc   : > { %v786_v50 = vmax.f32 %v753_v56, 0.0  ;;  %v979_v56 = vld [vmem:[%s2199_s6] sm:$0xff] }
  0xe0   : > { %v711_v57 = vpop.f32.mrf.mxu0 }
  0xe1   : > { %v764_v58 = vpop.f32.mrf.mxu1  ;;  %v712_v31 = vadd.f32 %v711_v57, %v614_v1  ;;  %v756_v57 = vadd.f32 %v755_v52, %v599_v30 }
  0xe2   : > { %v765_v32 = vadd.f32 %v764_v58, %v614_v1  ;;  %v791_v58 = vmax.f32 %v709_v36, 0.0 }
  0xe3   : > { %v793_v42 = vmax.f32 %v712_v31, 0.0  ;;  %v788_v52 = vmax.f32 %v756_v57, 0.0 }
  0xe8   : > { %v714_v59 = vpop.f32.mrf.mxu0 }
  0xe9   : > { %v767_v60 = vpop.f32.mrf.mxu1  ;;  %v715_v26 = vadd.f32 %v714_v59, %v619_v9  ;;  %v794_v59 = vmax.f32 %v765_v32, 0.0 }
  0xea   : > { %v768_v27 = vadd.f32 %v767_v60, %v619_v9  ;;  %v703_v60 = vadd.f32 %v702_v51, %v599_v30  ;;  %v894_v30 = vpop.permute.xlu1 %893 }
  0xeb   : > { %v795_v38 = vmax.f32 %v715_v26, 0.0 }
  0xec   : > { %v796_v39 = vmax.f32 %v768_v27, 0.0  ;;  %v787_v51 = vmax.f32 %v703_v60, 0.0 }
  0xf0   : > { %v717_v62 = vpop.f32.mrf.mxu0 }
  0xf1   : > { %v770_v63 = vpop.f32.mrf.mxu1  ;;  %v718_v21 = vadd.f32 %v717_v62, %v624_v0  ;;  %v589_v62 = vpop.permute.xlu0 %588 }
  0xf2   : > { %v771_v22 = vadd.f32 %v770_v63, %v624_v0  ;;  %v789_v63 = vmax.f32 %v706_v40, 0.0  ;;  %v790_v0 = vmax.f32 %v759_v41, 0.0  ;;  %v697_v54 = vadd.f32 %v1981_v47, %v589_v62 }
  0xf3   : > { %v797_v33 = vmax.f32 %v718_v21, 0.0  ;;  %v750_v1 = vadd.f32 %v1983_v48, %v589_v62 }
  0xf4   : > { %v798_v34 = vmax.f32 %v771_v22, 0.0  ;;  %v783_v47 = vmax.f32 %v697_v54, 0.0 }
  0xf8   : > { %v720_v2 = vpop.f32.mrf.mxu0 }
  0xf9   : > { %v773_v3 = vpop.f32.mrf.mxu1  ;;  %v721_v17 = vadd.f32 %v720_v2, %v629_v8  ;;  %v579_v2 = vpop.permute.xlu2 %578 }
  0xfa   : > { %v774_v18 = vadd.f32 %v773_v3, %v629_v8  ;;  %v694_v3 = vadd.f32 %v1977_v45, %v584_v53  ;;  %v785_v8 = vmax.f32 %v700_v55, 0.0  ;;  %v691_v9 = vadd.f32 %v1973_v43, %v579_v2  ;;  %v873_v43 = vld [vmem:[%s2198_s5] sm:$0xff]  ;;  %v982_v53 = vld [vmem:[%s2199_s6 + $0x18] sm:$0xff] }
  0xfb   : > { %v799_v28 = vmax.f32 %v721_v17, 0.0  ;;  %v744_v12 = vadd.f32 %v1975_v44, %v579_v2 }
  0xfc   : > { %v800_v29 = vmax.f32 %v774_v18, 0.0  ;;  %v781_v48 = vmax.f32 %v694_v3, 0.0  ;;  %v779_v17 = vmax.f32 %v691_v9, 0.0 }
  0xfd   : > { %v780_v45 = vmax.f32 %v744_v12, 0.0 }
 0x100   : > { %v723_v15 = vpop.f32.mrf.mxu0 }
 0x101   : > { %v776_v16 = vpop.f32.mrf.mxu1  ;;  %v724_v19 = vadd.f32 %v723_v15, %v634_v61  ;;  %v784_v15 = vmax.f32 %v750_v1, 0.0 }
 0x102   : > { %v777_v20 = vadd.f32 %v776_v16, %v634_v61  ;;  %v792_v61 = vmax.f32 %v762_v37, 0.0  ;;  %v782_v16 = vmax.f32 %v747_v49, 0.0  ;;  %v1005_v49 = vpop.permute.xlu1 %1004 }
 0x103   : > { %v801_v23 = vmax.f32 %v724_v19, 0.0 }
 0x104   : > { %v802_v24 = vmax.f32 %v777_v20, 0.0 }
 0x105   : > { %818 = vmatpush.msra.mxu2 %v801_v23 }
 0x106   : > { %838 = vmatpush.msra.mxu3 %v802_v24 }
 0x107   : > { %819 = vmatpush.msra.mxu2 %v799_v28 }
 0x108   : > { %839 = vmatpush.msra.mxu3 %v800_v29  ;;  %v899_v29 = vpop.permute.xlu0 %898 }
 0x109   : > { %820 = vmatpush.msra.mxu2 %v797_v33 }
 0x10a   : > { %840 = vmatpush.msra.mxu3 %v798_v34 }
 0x10b   : > { %821 = vmatpush.msra.mxu2 %v795_v38 }
 0x10c   : > { %841 = vmatpush.msra.mxu3 %v796_v39 }
 0x10d   : > { %822 = vmatpush.msra.mxu2 %v793_v42 }
 0x10e   : > { %842 = vmatpush.msra.mxu3 %v794_v59 }
 0x10f   : > { %823 = vmatpush.msra.mxu2 %v791_v58 }
 0x110   : > { %843 = vmatpush.msra.mxu3 %v792_v61  ;;  %v884_v41 = vpop.permute.xlu0 %883 }
 0x111   : > { %824 = vmatpush.msra.mxu2 %v789_v63  ;;  %v980_v63 = vld [vmem:[%s2199_s6 + $0x8] sm:$0xff] }
 0x112   : > { %844 = vmatpush.msra.mxu3 %v790_v0  ;;  %v981_v0 = vld [vmem:[%s2199_s6 + $0x10] sm:$0xff] }
 0x113   : > { %825 = vmatpush.msra.mxu2 %v787_v51 }
 0x114   : > { %845 = vmatpush.msra.mxu3 %v788_v52 }
 0x115   : > { %826 = vmatpush.msra.mxu2 %v785_v8 }
 0x116   : > { %846 = vmatpush.msra.mxu3 %v786_v50 }
 0x117   : > { %827 = vmatpush.msra.mxu2 %v783_v47 }
 0x118   : > { %847 = vmatpush.msra.mxu3 %v784_v15 }
 0x119   : > { %828 = vmatpush.msra.mxu2 %v781_v48  ;;  %v995_v48 = vpop.permute.xlu0 %994 }
 0x11a   : > { %848 = vmatpush.msra.mxu3 %v782_v16 }
 0x11b   : > { %829 = vmatpush.msra.mxu2 %v779_v17 }
 0x11c   : > { %849 = vmatpush.msra.mxu3 %v780_v45  ;;  %1435 = vmatmul.msk.f32.vlgmr.msra.gmra.mxu2 %vm810_vm1, %v803_v46 }
 0x11d   : > { %1436 = vmatmul.msk.f32.vlgmr.msra.gmra.mxu3 %vm810_vm1, %v803_v46  ;;  %925 = vmatpush.msrb.mxu2 %v1832_v4  ;;  %v874_v4 = vld [vmem:[%s2198_s5 + $0x8] sm:$0xff] }
 0x11e   : > { %954 = vmatpush.msrb.mxu3 %v1834_v5  ;;  %v875_v5 = vld [vmem:[%s2198_s5 + $0x10] sm:$0xff] }
 0x11f   : > { %926 = vmatpush.msrb.mxu2 %v1836_v6  ;;  %v876_v6 = vld [vmem:[%s2198_s5 + $0x18] sm:$0xff] }
 0x120   : > { %955 = vmatpush.msrb.mxu3 %v1840_v7  ;;  %v889_v7 = vpop.permute.xlu2 %888 }
 0x121   : > { %927 = vmatpush.msrb.mxu2 %v1848_v10 }
 0x122   : > { %956 = vmatpush.msrb.mxu3 %v1850_v11 }
 0x123   : > { %928 = vmatpush.msrb.mxu2 %v1857_v13 }
 0x124   : > { %957 = vmatpush.msrb.mxu3 %v1859_v14  ;;  %1437 = vmatmul.msk.f32.vlgmr.msrb.gmra.mxu2 %vm636_vm0, %v873_v43 }
 0x125   : > { %1441 = vmatmul.msk.f32.vlgmr.msrb.gmra.mxu3 %vm636_vm0, %v873_v43  ;;  %v990_v43 = vpop.permute.xlu1 %989 }
 0x128   : > { %v2028_v10 = vpop.permute.xlu2 %999 }
 0x12c   : > { %1438 = vmatmul.msk.f32.gmra.mxu2 %vm636_vm0, %v874_v4 }
 0x12d   : > { %1442 = vmatmul.msk.f32.gmra.mxu3 %vm636_vm0, %v874_v4 }
 0x130   : > { %v808_v11 = vpop.permute.xlu2 %807 }
 0x134   : > { %1439 = vmatmul.msk.f32.gmra.mxu2 %vm636_vm0, %v875_v5 }
 0x135   : > { %1443 = vmatmul.msk.f32.gmra.mxu3 %vm636_vm0, %v875_v5 }
 0x13c   : > { %1440 = vmatmul.msk.f32.gmra.mxu2 %vm636_vm0, %v876_v6 }
 0x13d   : > { %1444 = vmatmul.msk.f32.gmra.mxu3 %vm636_vm0, %v876_v6 }
 0x19f   : > { %v831_v13 = vpop.f32.mrf.mxu2 }
 0x1a0   : > { %v851_v14 = vpop.f32.mrf.mxu3  ;;  %v832_v44 = vadd.f32 %v831_v13, %v808_v11 }
 0x1a1   : > { %v852_v18 = vadd.f32 %v851_v14, %v808_v11 }
 0x1a2   : > { %861 = vst.sshfl [vmem:[#allocation1] sm:$0xff pattern:$0x73625140] %v832_v44 }
 0x1a3   : > { %v856_v19 = vrot.slane %v852_v18, 6  ;;  %862 = vst.sshfl [vmem:[#allocation1 + $0x8] sm:$0xff pattern:$0x73625140] %v852_v18 }
 0x1a5   : > { %v858_v20 = vsel %vm857_vm2, %v832_v44, %v856_v19 }
 0x1a6   : > { %860 = vst [vmem:[%s2179_s21] sm:$0xf] %v858_v20 }
 0x1a7   : > { %v930_v21 = vpop.f32.mrf.mxu2 }
 0x1a8   : > { %v959_v22 = vpop.f32.mrf.mxu3  ;;  %v931_v42 = vadd.f32 %v930_v21, %v884_v41 }
 0x1a9   : > { %v960_v59 = vadd.f32 %v959_v22, %v884_v41 }
 0x1aa   : > { %v864_v23 = vld [vmem:[#allocation1 + $0x1] ss:$4 sm:$0xff]  ;;  %v971_v62 = vmax.f32 %v931_v42, 0.0 }
 0x1ab   : > { %867 = vst.sshfl [vmem:[#allocation1] sm:$0xff pattern:$0x75316420] %v832_v44  ;;  %v972_v55 = vmax.f32 %v960_v59, 0.0  ;;  %v1085_v44 = vld [vmem:[%s2166_s7] sm:$0x3] }
 0x1ac   : > { %868 = vst.sshfl [vmem:[#allocation1 + $0x8] sm:$0xff pattern:$0x75316420] %v852_v18 }
 0x1ad   : > { %866 = vst [vmem:[%s2180_s22] sm:$0xf] %v864_v23  ;;  %s1191_s22 = scalar_lea.hbm %s2171_s12, %s2078_s24 }
 0x1ae   : > { %s1195_s0 = sshll.u32 %s1191_s22, 4  ;;  %s1196_s0 = int_to_ptr.hbm [resolvable:$true] %s1195_s0 }
 0x1af   : > { %v933_v24 = vpop.f32.mrf.mxu2  ;;  %s1554_s2 = sshra.s32 %s1196_s0, 4  ;;  %s1555_s2 = int_to_ptr.hbm [resolvable:$true] %s1554_s2 }
 0x1b0   : > { %v962_v25 = vpop.f32.mrf.mxu3  ;;  %v934_v37 = vadd.f32 %v933_v24, %v889_v7  ;;  %s1556_s3 = scalar_lea.hbm %s1555_s2, 4  ;;  %p1561_p1 = scmp.lt.s32.totalorder %s1555_s2, %s2171_s12 }
 0x1b1   : > { %v963_v38 = vadd.f32 %v962_v25, %v889_v7  ;;  %p1557_p12 = scmp.ne.s32.totalorder %s1555_s2, %s1556_s3  ;;  %p1562_p2 = scmp.lt.s32.totalorder %s1560_s4, %s1556_s3 }
 0x1b2   : > { %v973_v58 = vmax.f32 %v934_v37, 0.0 }
 0x1b3   : > { %v870_v26 = vld [vmem:[#allocation1 + $0x1] ss:$2 sm:$0xff]  ;;  %v974_v61 = vmax.f32 %v963_v38, 0.0  ;;  %p1558_p13 = pnand %p1557_p12, %p1798_p4  ;;  %p1563_p3 = por %p1562_p2, %p1561_p1 }
 0x1b4   : > { %872 = vst [vmem:[%s541_s28] sm:$0x77] %v870_v26  ;;  %s2075_s28 = sand.u32 1, %s2200_s26  }
 0x1b5   : > { %s1147_s1 = scalar_lea.sflag [#allocation5], %s2075_s28  ;;  %p1559_p0 = pneg %p1558_p13 }
 0x1b7   : > { %v936_v27 = vpop.f32.mrf.mxu2  ;;  %p1564_p5 = pnand %p1563_p3, %p1559_p0 }
 0x1b8   : > { %v965_v28 = vpop.f32.mrf.mxu3  ;;  %v937_v33 = vadd.f32 %v936_v27, %v894_v30 }
 0x1b9   : > { %v966_v34 = vadd.f32 %v965_v28, %v894_v30 }
 0x1ba   : > { %v975_v60 = vmax.f32 %v937_v33, 0.0 }
 0x1bb   : > { %v976_v57 = vmax.f32 %v966_v34, 0.0 }
 0x1bf   : > { %v939_v31 = vpop.f32.mrf.mxu2 }
 0x1c0   : > { %v968_v32 = vpop.f32.mrf.mxu3  ;;  %v940_v35 = vadd.f32 %v939_v31, %v899_v29 }
 0x1c1   : > { %v969_v36 = vadd.f32 %v968_v32, %v899_v29 }
 0x1c2   : > { %v977_v39 = vmax.f32 %v940_v35, 0.0 }
 0x1c3   : > { %v978_v40 = vmax.f32 %v969_v36, 0.0 }
 0x1c4   : > { %1031 = vmatpush.msra.mxu2 %v977_v39 }
 0x1c5   : > { %1060 = vmatpush.msra.mxu3 %v978_v40 }
 0x1c6   : > { %1032 = vmatpush.msra.mxu2 %v975_v60 }
 0x1c7   : > { %1061 = vmatpush.msra.mxu3 %v976_v57 }
 0x1c8   : > { %1033 = vmatpush.msra.mxu2 %v973_v58 }
 0x1c9   : > { %1062 = vmatpush.msra.mxu3 %v974_v61 }
 0x1ca   : > { %1034 = vmatpush.msra.mxu2 %v971_v62 }
 0x1cb   : > { %1063 = vmatpush.msra.mxu3 %v972_v55  ;;  %1445 = vmatmul.msk.f32.vlgmr.msra.gmra.mxu2 %vm636_vm0, %v979_v56 }
 0x1cc   : > { %1449 = vmatmul.msk.f32.vlgmr.msra.gmra.mxu3 %vm636_vm0, %v979_v56 }
 0x1d3   : > { %1446 = vmatmul.msk.f32.gmra.mxu2 %vm636_vm0, %v980_v63 }
 0x1d4   : > { %1450 = vmatmul.msk.f32.gmra.mxu3 %vm636_vm0, %v980_v63 }
 0x1db   : > { %1447 = vmatmul.msk.f32.gmra.mxu2 %vm636_vm0, %v981_v0 }
 0x1dc   : > { %1451 = vmatmul.msk.f32.gmra.mxu3 %vm636_vm0, %v981_v0 }
 0x1e3   : > { %1448 = vmatmul.msk.f32.gmra.mxu2 %vm636_vm0, %v982_v53 }
 0x1e4   : > { %1452 = vmatmul.msk.f32.gmra.mxu3 %vm636_vm0, %v982_v53 }
 0x24e   : > { %v1036_v54 = vpop.f32.mrf.mxu2 }
 0x24f   : > { %v1065_v1 = vpop.f32.mrf.mxu3  ;;  %v1037_v4 = vadd.f32 %v1036_v54, %v990_v43 }
 0x250   : > { %v1066_v5 = vadd.f32 %v1065_v1, %v990_v43 }
 0x252   : > { %v1078_v14 = vmax.f32 %v1066_v5, 0.0 }
 0x256   : > { %v1039_v51 = vpop.f32.mrf.mxu2 }
 0x257   : > { %v1068_v52 = vpop.f32.mrf.mxu3  ;;  %v1040_v16 = vadd.f32 %v1039_v51, %v995_v48 }
 0x258   : > { %v1069_v17 = vadd.f32 %v1068_v52, %v995_v48 }
 0x259   : > { %v1079_v11 = vmax.f32 %v1040_v16, 0.0 }
 0x25a   : > { %v1080_v13 = vmax.f32 %v1069_v17, 0.0 }
 0x25e   : > { %v1042_v2 = vpop.f32.mrf.mxu2 }
 0x25f   : > { %v1071_v3 = vpop.f32.mrf.mxu3  ;;  %v1043_v9 = vadd.f32 %v1042_v2, %v2028_v10 }
 0x260   : > { %v1072_v12 = vadd.f32 %v1071_v3, %v2028_v10  ;;  %v1077_v10 = vmax.f32 %v1037_v4, 0.0 }
 0x261   : > { %v1081_v6 = vmax.f32 %v1043_v9, 0.0 }
 0x262   : > { %v1082_v7 = vmax.f32 %v1072_v12, 0.0 }
 0x266   : > { %v1045_v8 = vpop.f32.mrf.mxu2 }
 0x267   : > { %v1074_v50 = vpop.f32.mrf.mxu3  ;;  %v1046_v47 = vadd.f32 %v1045_v8, %v1005_v49 }
 0x268   : > { %v1075_v15 = vadd.f32 %v1074_v50, %v1005_v49 }
 0x269   : > { %v1083_v45 = vmax.f32 %v1046_v47, 0.0 }
 0x26a   : > { %v1084_v46 = vmax.f32 %v1075_v15, 0.0 }
 0x26b   : > { %1107 = vmatpush.msrb.mxu2 %v1083_v45 }
 0x26c   : > { %1127 = vmatpush.msrb.mxu3 %v1084_v46 }
 0x26d   : > { %1108 = vmatpush.msrb.mxu2 %v1081_v6 }
 0x26e   : > { %1128 = vmatpush.msrb.mxu3 %v1082_v7 }
 0x26f   : > { %1109 = vmatpush.msrb.mxu2 %v1079_v11 }
 0x270   : > { %1129 = vmatpush.msrb.mxu3 %v1080_v13 }
 0x271   : > { %1110 = vmatpush.msrb.mxu2 %v1077_v10 }
 0x272   : > { %1130 = vmatpush.msrb.mxu3 %v1078_v14  ;;  %1453 = vmatmul.msk.f32.vlgmr.msrb.gmra.mxu2 %vm636_vm0, %v1085_v44 }
 0x273   : > { %1454 = vmatmul.msk.f32.vlgmr.msrb.gmra.mxu3 %vm636_vm0, %v1085_v44 }
 0x274   : > { %1567 = shalt.err (!%p1564_p5)
}
 0x275   : > { %1472 = dma.vmem_to_hbm [thread:$0]  (%p1798_p4), %s1194_s27, 64, %s1196_s0, %s1147_s1  }
 0x276   : > { %s1174_s19 = scalar_lea.hbm %s2170_s11, %s2078_s24  ;;  %s2202_s16 = scalar_lea.vmem [#allocation2], %s2033_s20 }
 0x277   : > { %s1176_s5 = sshll.u32 %s2202_s16, 4  ;;  %s1178_s2 = sshll.u32 %s1174_s19, 4  ;;  %s1177_s5 = int_to_ptr.vmem [resolvable:$true] %s1176_s5  ;;  %s1179_s2 = int_to_ptr.hbm [resolvable:$true] %s1178_s2 }
 0x278   : > { %s2203_s3 = sand.u32 1, %s1662_s30   ;;  %s1582_s26 = sshra.s32 %s1179_s2, 4  ;;  %s1583_s26 = int_to_ptr.hbm [resolvable:$true] %s1582_s26 }
 0x279   : > { %s1142_s4 = scalar_lea.sflag [#allocation3], %s2203_s3  ;;  %s1584_s21 = scalar_lea.hbm %s1583_s26, 4 }
 0x27a   : > { %p1585_p6 = scmp.ne.s32.totalorder %s1583_s26, %s1584_s21  ;;  %s1588_s27 = scalar_lea.hbm %s2170_s11, 8 }
 0x27b   : > { %p1589_p10 = scmp.lt.s32.totalorder %s1583_s26, %s2170_s11  ;;  %p1590_p11 = scmp.lt.s32.totalorder %s1588_s27, %s1584_s21 }
 0x27c   : > { %p1586_p7 = pnand %p1585_p6, %p1798_p4 }
 0x27d   : > { %p1591_p12 = por %p1590_p11, %p1589_p10 }
 0x27e   : > { %p1587_p9 = pneg %p1586_p7 }
 0x280   : > { %p1592_p13 = pnand %p1591_p12, %p1587_p9 }
 0x282   : > { %1595 = shalt.err (!%p1592_p13)
}
 0x283   : > { %1471 = dma.vmem_to_hbm [thread:$0]  (%p1798_p4), %s1177_s5, 64, %s1179_s2, %s1142_s4   ;;  %v1090_v18 = vpop.permute.xlu0 %1089 }
 0x284   : > { %s1212_s3 = scalar_lea.hbm %s2173_s14, %s2078_s24  ;;  %s520_s6 = scalar_lea.vmem [#allocation6], %s2033_s20 }
 0x285   : > { %s1214_s26 = sshll.u32 %s520_s6, 4  ;;  %s1216_s21 = sshll.u32 %s1212_s3, 4  ;;  %s1215_s26 = int_to_ptr.vmem [resolvable:$true] %s1214_s26  ;;  %s1217_s21 = int_to_ptr.hbm [resolvable:$true] %s1216_s21 }
 0x286   : > { %s1610_s5 = sshra.s32 %s1217_s21, 4  ;;  %s1616_s20 = scalar_lea.hbm %s2173_s14, 8  ;;  %s1611_s5 = int_to_ptr.hbm [resolvable:$true] %s1610_s5 }
 0x287   : > { %s1612_s2 = scalar_lea.hbm %s1611_s5, 4  ;;  %p1617_p3 = scmp.lt.s32.totalorder %s1611_s5, %s2173_s14 }
 0x288   : > { %p1613_p0 = scmp.ne.s32.totalorder %s1611_s5, %s1612_s2  ;;  %p1618_p5 = scmp.lt.s32.totalorder %s1616_s20, %s1612_s2 }
 0x28a   : > { %p1614_p1 = pnand %p1613_p0, %p1798_p4  ;;  %p1619_p6 = por %p1618_p5, %p1617_p3 }
 0x28c   : > { %p1615_p2 = pneg %p1614_p1 }
 0x28e   : > { %p1620_p7 = pnand %p1619_p6, %p1615_p2 }
 0x2f5   : > { %v1112_v19 = vpop.f32.mrf.mxu2 }
 0x2f6   : > { %v1132_v20 = vpop.f32.mrf.mxu3  ;;  %v1113_v22 = vadd.f32 %v1112_v19, %v1090_v18 }
 0x2f7   : > { %v1133_v21 = vadd.f32 %v1132_v20, %v1090_v18 }
 0x2f9   : > { %v1137_v23 = vrot.slane %v1133_v21, 6 }
 0x2fb   : > { %v1138_v24 = vsel %vm857_vm2, %v1113_v22, %v1137_v23 }
 0x2fc   : > { %1140 = vst [vmem:[%s520_s6] sm:$0xf] %v1138_v24 }
 0x2fd   : > { %1623 = shalt.err (!%p1620_p7)
}
 0x2fe   : > { %1473 = dma.vmem_to_hbm [thread:$0]  (%p1798_p4), %s1215_s26, 64, %s1217_s21, %s1147_s1  }
 0x2ff PF: > { %p1487_p9 = scmp.ge.s32.totalorder %s1678_s18, 2  ;;  %s1228_s22 = sand.u32 1, %s1658_s29  }
 0x300   : > { %s1229_s17 = scalar_lea.sflag [#allocation3], %s1228_s22 }
 0x301   : > { %p1478_p10 = pnand %p1487_p9, %p1807_p8 }
 0x303   : > { %p1479_p11 = pneg %p1478_p10 }
 0x305   : > { %1649 = dma.done.wait (%p1479_p11), %s1229_s17, 64  }
 0x306   : > { %1651 = vsyncadd (%p1479_p11), %s1229_s17, 4294967232  ;;  %s2204_s19 = sadd.s32 4294967294, %s1678_s18  }
 0x307   : > { %s1238_s16 = sand.u32 1, %s2204_s19  }
 0x308   : > { %s1239_s3 = scalar_lea.sflag [#allocation5], %s1238_s16 }
 0x309   : > { %1653 = dma.done.wait (%p1479_p11), %s1239_s3, 128  }
 0x30a   : > { %1655 = vsyncadd (%p1479_p11), %s1239_s3, 4294967168  ;;  %s31_s18 = sadd.s32 1, %s1678_s18   ;;  %s2205_s1 = sld [smem:[#allocation11_spill]] }
 0x30b   : > { %p28_p4 = scmp.ge.s32.totalorder %s31_s18, 4   ;;  %s2206_s16 = sld [smem:[#allocation9_spill]] }
 0x30c   : > { %s2207_s17 = sld [smem:[#allocation10_spill]]  ;;  %s2208_s29 = smov %s1662_s30 }
 0x30d   : > { %s2209_s30 = smov %s1666_s15  ;;  %30 = sbr.rel (!%p28_p4) target bundleno = 14 (0xe), region = 145 }
 0x310   : > { %s2210_s15 = smov %s2205_s1 }
 0x312   :  { %1267 = vsyncpa [#allocation3], 1 }
 0x313   :  { %1269 = vsyncpa [#allocation3 + $0x1], 1 }
 0x314   :  { %1270 = vsyncpa [#allocation5], 1 }
 0x315   :  { %1272 = vsyncpa [#allocation5 + $0x1], 1 }

</bundles_post_ra>
